<compile_context>
chip_gen: v7x
topology: tpu7x:2x2x1
jax: 0.10.0
libtpu: 0.0.40
codegen_flags: <defaults>
</compile_context>

<pallas_src>
import math
import functools

import jax
import jax.numpy as jnp
from jax import lax
from jax.experimental import pallas as pl
from jax.experimental.pallas import tpu as pltpu


def _trunc_normal_weight(key, out_features, in_features, dtype=jnp.float32):
    """Matches weight_initializer(): trunc_normal(0, std) clipped to [-2std, 2std],
    std = sqrt(1 / fan_avg / 10), fan_avg = 0.5*(in+out). Weight shape (out, in)."""
    fan_avg = 0.5 * (in_features + out_features)
    std = math.sqrt(1.0 / fan_avg / 10.0)
    w = jax.random.truncated_normal(key, -2.0, 2.0, (out_features, in_features), dtype) * std
    return w


def _cdiv(a, b):
    return -(-a // b)


def _round_up(x, m):
    return ((x + m - 1) // m) * m


def _row_tiling(n_rows, max_tm=1024):
    """Pick (tile_rows, num_tiles).

    - Single tile whenever the whole problem fits (block == full array, so no (8,128)
      divisibility requirement and no padding; avoids per-step pipeline overhead).
    - Otherwise tiles are multiples of 128 rows (keeps the transposed, lane-dense
      output block legal) and we try to make the tile count even so v7x's two
      TensorCores split the 'parallel' row axis evenly.  The last block may be
      partial; Pallas clips it.
    """
    n_rows = max(int(n_rows), 1)
    max_tm = max(_round_up(max_tm, 128), 128)
    if n_rows <= max_tm:
        return n_rows, 1
    num_tiles = _cdiv(n_rows, max_tm)
    if num_tiles % 2 == 1:
        # Slightly smaller multiple-of-128 tile that yields an even tile count, if one
        # exists.  If rounding defeats it, keep the odd count (imbalance ~1/num_tiles,
        # only significant when num_tiles is small).
        tm_try = _round_up(_cdiv(n_rows, num_tiles + 1), 128)
        if _cdiv(n_rows, tm_try) % 2 == 0:
            return tm_try, _cdiv(n_rows, tm_try)
    return max_tm, num_tiles


def _mlp_kernel(x_ref, w1_ref, w2_ref, wout_t_ref, ot_ref, *, depth):
    # x_ref:      (tm, width)            current row-tile of activations (f32)
    # w1_ref:     (depth, width, width)  fc1 weights, (in, out) per layer (bf16)
    # w2_ref:     (depth, width, width)  fc2 weights, (in, out) per layer (bf16)
    # wout_t_ref: (output_dims, width)   final Linear weight, (out, in)    (bf16)
    # ot_ref:     (output_dims, tm)      transposed (lane-dense) output block
    mxu_dt = w1_ref.dtype
    h = x_ref[...].astype(jnp.float32)
    # depth is a small static constant; fully unrolled.
    # TODO(synk): for depth >~ 8 switch to lax.fori_loop(..., unroll=2) with dynamic
    # w1_ref[d]/w2_ref[d] indexing to bound live ranges and compile time.
    for d in range(depth):
        residual = h
        t = jnp.dot(h.astype(mxu_dt), w1_ref[d],
                    preferred_element_type=jnp.float32)
        t = jnp.maximum(t, 0.0)                       # ReLU (f32 on VPU)
        h = jnp.dot(t.astype(mxu_dt), w2_ref[d],
                    preferred_element_type=jnp.float32)
        h = jnp.maximum(h + residual, 0.0)            # residual add + ReLU (f32)
    # Final projection directly in (output_dims, tm) orientation:
    # out_t[o, m] = sum_k w_out_t[o, k] * h[m, k]  — A @ B^T form, no explicit transpose.
    out_t = lax.dot_general(wout_t_ref[...], h.astype(mxu_dt),
                            dimension_numbers=(((1,), (1,)), ((), ())),
                            preferred_element_type=jnp.float32)
    ot_ref[...] = out_t.astype(ot_ref.dtype)


def temp_mlp_forward(data, w1_stack, w2_stack, w_out, *, max_tm=1024,
                     mxu_dtype=jnp.bfloat16):
    """Forward pass of tempMLP (eval mode; dropout is identity).

    data:     (B, P, width) or (N, width)
    w1_stack: (depth, width, width)  -- fc1 weights per layer, laid out (in, out)
    w2_stack: (depth, width, width)  -- fc2 weights per layer, laid out (in, out)
    w_out:    (width, output_dims)   -- final Linear weight, laid out (in, out)

    Pass mxu_dtype=None for bit-level f32 parity with the torch module (the f32 MXU
    cost is negligible at width=32).
    """
    if data.ndim == 3:
        b, p, f = data.shape
        x = data.reshape(-1, f)
    else:
        b = p = None
        x = data

    n, width = x.shape
    depth = w1_stack.shape[0]
    output_dims = w_out.shape[-1]

    # bf16 weights run the MXU at native rate on v6e/v7x and halve weight DMA / VMEM;
    # accumulation and all elementwise math stay f32 (v5e has no bf16 VPU/EUP).
    # No-op when the caller pre-casts; folded/fused when the whole call is jitted.
    if mxu_dtype is not None and w1_stack.dtype != mxu_dtype:
        w1_stack = w1_stack.astype(mxu_dtype)
    if mxu_dtype is not None and w2_stack.dtype != mxu_dtype:
        w2_stack = w2_stack.astype(mxu_dtype)
    if mxu_dtype is not None and w_out.dtype != mxu_dtype:
        w_out = w_out.astype(mxu_dtype)
    w_out_t = w_out.T  # (output_dims, width); tiny, constant-folded under jit

    tm, num_tiles = _row_tiling(n, max_tm=max_tm)

    def _nbytes(a):
        return a.size * a.dtype.itemsize

    flops = 2 * n * width * (2 * depth * width + output_dims)
    bytes_accessed = (_nbytes(x) + _nbytes(w1_stack) + _nbytes(w2_stack)
                      + _nbytes(w_out_t) + n * output_dims * x.dtype.itemsize)

    # VMEM footprint: single-buffered weights + double-buffered x/out tiles + headroom
    # for f32 intermediates.  Only raise the scoped limit if the default would be
    # exceeded (scaled width/depth configs); cap at v7x's 64 MiB physical VMEM.
    weight_bytes = _nbytes(w1_stack) + _nbytes(w2_stack) + _nbytes(w_out_t)
    act_bytes = 2 * tm * (width + output_dims) * 4 + 4 * tm * width * 4
    vmem_limit = None
    if weight_bytes + act_bytes > (30 << 20):
        vmem_limit = min(int((weight_bytes + act_bytes) * 5 // 4), 64 << 20)

    kernel = functools.partial(_mlp_kernel, depth=depth)

    # Constant-index-map weight blocks never change across grid steps: single-buffer
    # them so they are resident once in VMEM (mandatory at scaled width/depth on v7x).
    weight_mode = pl.Buffered(1)

    out_t = pl.pallas_call(
        kernel,
        out_shape=jax.ShapeDtypeStruct((output_dims, n), x.dtype),
        grid_spec=pltpu.PrefetchScalarGridSpec(
            num_scalar_prefetch=0,
            grid=(num_tiles,),
            in_specs=[
                pl.BlockSpec((tm, width), lambda i: (i, 0)),               # x row tile
                pl.BlockSpec((depth, width, width), lambda i: (0, 0, 0),
                             pipeline_mode=weight_mode),                   # fc1 weights
                pl.BlockSpec((depth, width, width), lambda i: (0, 0, 0),
                             pipeline_mode=weight_mode),                   # fc2 weights
                pl.BlockSpec((output_dims, width), lambda i: (0, 0),
                             pipeline_mode=weight_mode),                   # output weight^T
            ],
            out_specs=pl.BlockSpec((output_dims, tm), lambda i: (0, i)),
        ),
        compiler_params=pltpu.CompilerParams(
            dimension_semantics=("parallel",),
            vmem_limit_bytes=vmem_limit),
        cost_estimate=pl.CostEstimate(flops=flops, transcendentals=0,
                                      bytes_accessed=bytes_accessed),
    )(x, w1_stack, w2_stack, w_out_t)

    # (output_dims, n) -> (n, output_dims): layout plumbing over output bytes only
    # (~output_dims/width of the x traffic); the kernel's stores stay lane-dense.
    out = out_t.T
    if p is not None:
        out = out.reshape(b, p, output_dims)
    return out


def _reference_forward(data, w1_stack, w2_stack, w_out):
    """Plain-JAX reference (eval mode). Uses the dtype of the supplied weights for the
    dot inputs and f32 accumulation, mirroring the kernel's arithmetic."""
    if data.ndim == 3:
        bb, pp, f = data.shape
        x = data.reshape(-1, f)
    else:
        pp = None
        x = data
    wd = w1_stack.dtype
    h = x.astype(jnp.float32)
    for d in range(w1_stack.shape[0]):
        res = h
        t = jnp.maximum(jnp.dot(h.astype(wd), w1_stack[d],
                                preferred_element_type=jnp.float32), 0.0)
        h = jnp.maximum(jnp.dot(t.astype(wd), w2_stack[d],
                                preferred_element_type=jnp.float32) + res, 0.0)
    out = jnp.dot(h.astype(w_out.dtype), w_out, preferred_element_type=jnp.float32)
    if pp is not None:
        out = out.reshape(bb, pp, -1)
    return out


if __name__ == "__main__":
    # tempMLP(width=32, depth=2, output_dims=4)
    width, depth, output_dims = 32, 2, 4
    batch, num_pixels = 2, 8

    root = jax.random.PRNGKey(0)
    k_data, k_params, k_data2, k_data3, k_data4 = jax.random.split(root, 5)
    layer_keys = jax.random.split(k_params, 2 * depth + 1)

    # Build weights exactly like the torch module, then transpose to (in, out).
    w1_list, w2_list = [], []
    for d in range(depth):
        w1_pt = _trunc_normal_weight(layer_keys[2 * d + 0], width, width)  # (out, in)
        w2_pt = _trunc_normal_weight(layer_keys[2 * d + 1], width, width)
        w1_list.append(w1_pt.T)  # (in, out)
        w2_list.append(w2_pt.T)
    w_out_pt = _trunc_normal_weight(layer_keys[-1], output_dims, width)    # (out, in)
    w1_stack = jnp.stack(w1_list, axis=0)   # (depth, width, width)
    w2_stack = jnp.stack(w2_list, axis=0)   # (depth, width, width)
    w_out = w_out_pt.T                      # (width, output_dims)

    # Pre-cast weights once (hoisted out of the forward) and jit the whole forward so
    # no per-call cast / layout work remains outside the kernel.
    w1_bf, w2_bf, wo_bf = (w1_stack.astype(jnp.bfloat16),
                           w2_stack.astype(jnp.bfloat16),
                           w_out.astype(jnp.bfloat16))
    forward = jax.jit(temp_mlp_forward)

    # --- test 1: canonical 3-D input (single row tile) ---
    data = jax.random.normal(k_data, (batch, num_pixels, width), dtype=jnp.float32)
    out = jax.block_until_ready(forward(data, w1_bf, w2_bf, wo_bf))
    assert out.shape == (batch, num_pixels, output_dims), out.shape
    ref_mixed = _reference_forward(data, w1_bf, w2_bf, wo_bf)       # kernel arithmetic
    ref_f32 = _reference_forward(data, w1_stack, w2_stack, w_out)   # module (f32) semantics
    assert jnp.allclose(out, ref_mixed, atol=1e-4, rtol=1e-4), "mismatch vs bf16 reference"
    assert jnp.allclose(out, ref_f32, atol=3e-2, rtol=3e-2), "mismatch vs f32 reference"

    # --- test 2: row count not a multiple of 8 (odd single-tile shape, no padding) ---
    data2 = jax.random.normal(k_data2, (3, 7, width), dtype=jnp.float32)
    out2 = jax.block_until_ready(forward(data2, w1_bf, w2_bf, wo_bf))
    ref2 = _reference_forward(data2, w1_bf, w2_bf, wo_bf)
    assert out2.shape == (3, 7, output_dims), out2.shape
    assert jnp.allclose(out2, ref2, atol=1e-4, rtol=1e-4), "mismatch (odd-shape case)"

    # --- test 3: 2-D input path ---
    data3 = jax.random.normal(k_data3, (8, width), dtype=jnp.float32)
    out3 = jax.block_until_ready(forward(data3, w1_bf, w2_bf, wo_bf))
    ref3 = _reference_forward(data3, w1_bf, w2_bf, wo_bf)
    assert out3.shape == (8, output_dims), out3.shape
    assert jnp.allclose(out3, ref3, atol=1e-4, rtol=1e-4), "mismatch (2-D input case)"

    # --- test 4: multi-tile path, even tile-count rounding, partial (clipped) last block ---
    data4 = jax.random.normal(k_data4, (2600, width), dtype=jnp.float32)
    out4 = jax.block_until_ready(forward(data4, w1_bf, w2_bf, wo_bf))
    ref4 = _reference_forward(data4, w1_bf, w2_bf, wo_bf)
    assert out4.shape == (2600, output_dims), out4.shape
    assert jnp.allclose(out4, ref4, atol=1e-4, rtol=1e-4), "mismatch (multi-tile ragged case)"

    print("KERNEL_OK")
</pallas_src>

<mosaic_0001>
module attributes {stable_mosaic.version = 11 : i64} {
  func.func @_mlp_kernel(%arg0: i32, %arg1: memref<16x32xf32, #tpu.memory_space<vmem>>, %arg2: memref<2x32x32xbf16, #tpu.memory_space<vmem>>, %arg3: memref<2x32x32xbf16, #tpu.memory_space<vmem>>, %arg4: memref<4x32xbf16, #tpu.memory_space<vmem>>, %arg5: memref<4x16xf32, #tpu.memory_space<vmem>>) attributes {dimension_semantics = [#tpu.dimension_semantics<parallel>], iteration_bounds = array<i64: 1>, scalar_prefetch = 0 : i64, scratch_operands = 0 : i64, tpu.core_type = #tpu.core_type<tc>, window_params = [{transform_indices = @transform_0, window_bounds = array<i64: 16, 32>}, {pipeline_mode = #tpu.pipeline_mode<synchronous>, transform_indices = @transform_1, window_bounds = array<i64: 2, 32, 32>}, {pipeline_mode = #tpu.pipeline_mode<synchronous>, transform_indices = @transform_2, window_bounds = array<i64: 2, 32, 32>}, {pipeline_mode = #tpu.pipeline_mode<synchronous>, transform_indices = @transform_3, window_bounds = array<i64: 4, 32>}, {transform_indices = @transform_4, window_bounds = array<i64: 4, 16>}]} {
    %c0 = arith.constant 0 : index
    %c0_0 = arith.constant 0 : index
    %0 = vector.load %arg1[%c0, %c0_0] : memref<16x32xf32, #tpu.memory_space<vmem>>, vector<16x32xf32>
    %1 = arith.truncf %0 : vector<16x32xf32> to vector<16x32xbf16>
    %c0_1 = arith.constant 0 : index
    %c0_2 = arith.constant 0 : index
    %c0_3 = arith.constant 0 : index
    %2 = vector.load %arg2[%c0_1, %c0_2, %c0_3] : memref<2x32x32xbf16, #tpu.memory_space<vmem>>, vector<1x32x32xbf16>
    %3 = vector.shape_cast %2 : vector<1x32x32xbf16> to vector<32x32xbf16>
    %cst = arith.constant dense<0.000000e+00> : vector<16x32xf32>
    %4 = tpu.matmul %1, %3, %cst {dimension_numbers = #tpu.dot_dimension_numbers<[1], [0], [0], [1], [0, 0, 1, 1], [], []>} : vector<16x32xbf16>, vector<32x32xbf16>, vector<16x32xf32> -> vector<16x32xf32>
    %cst_4 = arith.constant 0.000000e+00 : f32
    %5 = vector.broadcast %cst_4 : f32 to vector<16x32xf32>
    %6 = arith.maximumf %4, %5 : vector<16x32xf32>
    %7 = arith.truncf %6 : vector<16x32xf32> to vector<16x32xbf16>
    %c0_5 = arith.constant 0 : index
    %c0_6 = arith.constant 0 : index
    %c0_7 = arith.constant 0 : index
    %8 = vector.load %arg3[%c0_5, %c0_6, %c0_7] : memref<2x32x32xbf16, #tpu.memory_space<vmem>>, vector<1x32x32xbf16>
    %9 = vector.shape_cast %8 : vector<1x32x32xbf16> to vector<32x32xbf16>
    %cst_8 = arith.constant dense<0.000000e+00> : vector<16x32xf32>
    %10 = tpu.matmul %7, %9, %cst_8 {dimension_numbers = #tpu.dot_dimension_numbers<[1], [0], [0], [1], [0, 0, 1, 1], [], []>} : vector<16x32xbf16>, vector<32x32xbf16>, vector<16x32xf32> -> vector<16x32xf32>
    %11 = arith.addf %10, %0 : vector<16x32xf32>
    %cst_9 = arith.constant 0.000000e+00 : f32
    %12 = vector.broadcast %cst_9 : f32 to vector<16x32xf32>
    %13 = arith.maximumf %11, %12 : vector<16x32xf32>
    %14 = arith.truncf %13 : vector<16x32xf32> to vector<16x32xbf16>
    %c1 = arith.constant 1 : index
    %c0_10 = arith.constant 0 : index
    %c0_11 = arith.constant 0 : index
    %15 = vector.load %arg2[%c1, %c0_10, %c0_11] : memref<2x32x32xbf16, #tpu.memory_space<vmem>>, vector<1x32x32xbf16>
    %16 = vector.shape_cast %15 : vector<1x32x32xbf16> to vector<32x32xbf16>
    %cst_12 = arith.constant dense<0.000000e+00> : vector<16x32xf32>
    %17 = tpu.matmul %14, %16, %cst_12 {dimension_numbers = #tpu.dot_dimension_numbers<[1], [0], [0], [1], [0, 0, 1, 1], [], []>} : vector<16x32xbf16>, vector<32x32xbf16>, vector<16x32xf32> -> vector<16x32xf32>
    %cst_13 = arith.constant 0.000000e+00 : f32
    %18 = vector.broadcast %cst_13 : f32 to vector<16x32xf32>
    %19 = arith.maximumf %17, %18 : vector<16x32xf32>
    %20 = arith.truncf %19 : vector<16x32xf32> to vector<16x32xbf16>
    %c1_14 = arith.constant 1 : index
    %c0_15 = arith.constant 0 : index
    %c0_16 = arith.constant 0 : index
    %21 = vector.load %arg3[%c1_14, %c0_15, %c0_16] : memref<2x32x32xbf16, #tpu.memory_space<vmem>>, vector<1x32x32xbf16>
    %22 = vector.shape_cast %21 : vector<1x32x32xbf16> to vector<32x32xbf16>
    %cst_17 = arith.constant dense<0.000000e+00> : vector<16x32xf32>
    %23 = tpu.matmul %20, %22, %cst_17 {dimension_numbers = #tpu.dot_dimension_numbers<[1], [0], [0], [1], [0, 0, 1, 1], [], []>} : vector<16x32xbf16>, vector<32x32xbf16>, vector<16x32xf32> -> vector<16x32xf32>
    %24 = arith.addf %23, %13 : vector<16x32xf32>
    %cst_18 = arith.constant 0.000000e+00 : f32
    %25 = vector.broadcast %cst_18 : f32 to vector<16x32xf32>
    %26 = arith.maximumf %24, %25 : vector<16x32xf32>
    %c0_19 = arith.constant 0 : index
    %c0_20 = arith.constant 0 : index
    %27 = vector.load %arg4[%c0_19, %c0_20] : memref<4x32xbf16, #tpu.memory_space<vmem>>, vector<4x32xbf16>
    %28 = arith.truncf %26 : vector<16x32xf32> to vector<16x32xbf16>
    %cst_21 = arith.constant dense<0.000000e+00> : vector<4x16xf32>
    %29 = tpu.matmul %27, %28, %cst_21 {dimension_numbers = #tpu.dot_dimension_numbers<[1], [1], [0], [0], [0, 0, 1, 0], [], []>} : vector<4x32xbf16>, vector<16x32xbf16>, vector<4x16xf32> -> vector<4x16xf32>
    %c0_22 = arith.constant 0 : index
    %c0_23 = arith.constant 0 : index
    %30 = vector.load %arg5[%c0_22, %c0_23] : memref<4x16xf32, #tpu.memory_space<vmem>>, vector<4x16xf32>
    tpu.vector_store %arg5[%c0_22, %c0_23], %29 {strides = array<i32>} : memref<4x16xf32, #tpu.memory_space<vmem>>, vector<4x16xf32>,
    return
  }
  func.func @transform_0(%arg0: i32) -> (i32, i32) {
    %c0_i32 = arith.constant 0 : i32
    %c0_i32_0 = arith.constant 0 : i32
    return %arg0, %c0_i32 : i32, i32
  }
  func.func @transform_1(%arg0: i32) -> (i32, i32, i32) {
    %c0_i32 = arith.constant 0 : i32
    %c0_i32_0 = arith.constant 0 : i32
    %c0_i32_1 = arith.constant 0 : i32
    %c0_i32_2 = arith.constant 0 : i32
    return %c0_i32, %c0_i32_0, %c0_i32_1 : i32, i32, i32
  }
  func.func @transform_2(%arg0: i32) -> (i32, i32, i32) {
    %c0_i32 = arith.constant 0 : i32
    %c0_i32_0 = arith.constant 0 : i32
    %c0_i32_1 = arith.constant 0 : i32
    %c0_i32_2 = arith.constant 0 : i32
    return %c0_i32, %c0_i32_0, %c0_i32_1 : i32, i32, i32
  }
  func.func @transform_3(%arg0: i32) -> (i32, i32) {
    %c0_i32 = arith.constant 0 : i32
    %c0_i32_0 = arith.constant 0 : i32
    %c0_i32_1 = arith.constant 0 : i32
    return %c0_i32, %c0_i32_0 : i32, i32
  }
  func.func @transform_4(%arg0: i32) -> (i32, i32) {
    %c0_i32 = arith.constant 0 : i32
    %c0_i32_0 = arith.constant 0 : i32
    return %c0_i32, %arg0 : i32, i32
  }
}

</mosaic_0001>

<bundles_post_ra>
// kernel: temp_mlp_forward.1
= control target key start
LH: loop header
LB: loop body
LE: loop exit
PB: predicated region body
PF: predicated region fallthrough
CT: control target
= control target key end

     0   :  { %9 = vsyncpa [#allocation3], 0  ;;  %s617_s0 = inlined_call_operand.hbm [shape: f32[16,32], index: 0, kind: input, shape index: {}]   ;;  %s618_s1 = inlined_call_operand.hbm [shape: bf16[2,32,32], index: 1, kind: input, shape index: {}]   ;;  %s619_s2 = inlined_call_operand.hbm [shape: bf16[2,32,32], index: 2, kind: input, shape index: {}]   ;;  %s620_s3 = inlined_call_operand.vmem [shape: bf16[4,32], index: 3, kind: input, shape index: {}]   ;;  %s621_s4 = inlined_call_operand.vmem [shape: f32[4,16], index: 4, kind: output, shape index: {}]  }
   0x1   :  { %10 = vsyncpa [#allocation5], 0  ;;  %s524_s15 = smov [#allocation4]   ;;  %s454_s19 = scalar_lea.hbm %s618_s1, 512 }
   0x2   :  { %s28_s16 = sshll.u32 %s524_s15, 4  ;;  %p455_p0 = scmp.ne.s32.totalorder %s618_s1, %s454_s19  ;;  %s29_s16 = int_to_ptr.vmem [resolvable:$true] %s28_s16 }
   0x3   :  { %p458_p1 = scmp.lt.u32.totalorder %s454_s19, %s618_s1 }
   0x5   :  { %p460_p2 = pnand %p458_p1, %p455_p0 }
   0x7   :  { %463 = shalt.err (!%p460_p2)
}
   0x8   :  { %s464_s24 = scalar_lea.vmem %s29_s16, 512  ;;  %p469_p4 = scmp.lt.s32.totalorder %s29_s16, %s29_s16 }
   0x9   :  { %p465_p3 = scmp.ne.s32.totalorder %s29_s16, %s464_s24  ;;  %p470_p5 = scmp.lt.s32.totalorder %s464_s24, %s464_s24 }
   0xb   :  { %p471_p6 = por %p470_p5, %p469_p4 }
   0xd   :  { %p472_p7 = pnand %p471_p6, %p465_p3 }
   0xf   :  { %475 = shalt.err (!%p472_p7)
}
  0x10   :  { %s525_s25 = smov 64   ;;  %s526_s26 = smov 4  }
  0x11   :  { %34 = dma.hbm_to_vmem [thread:$0]  %s618_s1, 512, %s29_s16, [#allocation5], %s525_s25, %s525_s25, %s526_s26  }
  0x12   :  { %s527_s29 = smov [#allocation2]   ;;  %s476_s7 = scalar_lea.hbm %s617_s0, 256 }
  0x13   :  { %s16_s30 = sshll.u32 %s527_s29, 4  ;;  %p477_p8 = scmp.ne.s32.totalorder %s617_s0, %s476_s7  ;;  %s17_s30 = int_to_ptr.vmem [resolvable:$true] %s16_s30 }
  0x14   :  { %p480_p9 = scmp.lt.u32.totalorder %s476_s7, %s617_s0 }
  0x16   :  { %p482_p10 = pnand %p480_p9, %p477_p8 }
  0x18   :  { %485 = shalt.err (!%p482_p10)
}
  0x19   :  { %s486_s12 = scalar_lea.vmem %s17_s30, 256  ;;  %p491_p12 = scmp.lt.s32.totalorder %s17_s30, %s17_s30 }
  0x1a   :  { %p487_p11 = scmp.ne.s32.totalorder %s17_s30, %s486_s12  ;;  %p492_p13 = scmp.lt.s32.totalorder %s486_s12, %s486_s12 }
  0x1c   :  { %p493_p0 = por %p492_p13, %p491_p12 }
  0x1e   :  { %p494_p1 = pnand %p493_p0, %p487_p11 }
  0x20   :  { %497 = shalt.err (!%p494_p1)
}
  0x21   :  { %s528_s1 = smov 128   ;;  %s529_s13 = smov 8  }
  0x22   :  { %22 = dma.hbm_to_vmem [thread:$0]  %s617_s0, 256, %s17_s30, [#allocation3], %s528_s1, %s528_s1, %s529_s13  }
  0x23   :  { %s530_s16 = smov [#allocation6]   ;;  %s498_s20 = scalar_lea.hbm %s619_s2, 512 }
  0x24   :  { %s40_s17 = sshll.u32 %s530_s16, 4  ;;  %p499_p2 = scmp.ne.s32.totalorder %s619_s2, %s498_s20  ;;  %s41_s17 = int_to_ptr.vmem [resolvable:$true] %s40_s17 }
  0x25   :  { %p502_p3 = scmp.lt.u32.totalorder %s498_s20, %s619_s2 }
  0x27   :  { %p504_p4 = pnand %p502_p3, %p499_p2 }
  0x29   :  { %507 = shalt.err (!%p504_p4)
}
  0x2a   :  { %s508_s27 = scalar_lea.vmem %s41_s17, 512  ;;  %p513_p6 = scmp.lt.s32.totalorder %s41_s17, %s41_s17 }
  0x2b   :  { %p509_p5 = scmp.ne.s32.totalorder %s41_s17, %s508_s27  ;;  %p514_p7 = scmp.lt.s32.totalorder %s508_s27, %s508_s27 }
  0x2d   :  { %p515_p8 = por %p514_p7, %p513_p6 }
  0x2f   :  { %p516_p9 = pnand %p515_p8, %p509_p5 }
  0x31   :  { %519 = shalt.err (!%p516_p9)
}
  0x32   :  { %46 = dma.hbm_to_vmem [thread:$0]  %s619_s2, 512, %s41_s17, [#allocation5], %s525_s25, %s525_s25, %s526_s26  }
  0x33   :  { %520 = dma.done.wait [#allocation3], 256  }
  0x34   :  { %521 = vsyncadd [#allocation3], 4294967040 }
  0x35   :  { %522 = dma.done.wait [#allocation5], 1024  }
  0x36   :  { %523 = vsyncadd [#allocation5], 4294966272  ;;  %v531_v0 = vmov 0.0   ;;  %vm532_vm0 = vmmov 0   ;;  %v446_v1 = vld [vmem:[#allocation4] sm:$0xff]   ;;  %v447_v2 = vld [vmem:[#allocation4 + $0x8] sm:$0xff]  }
  0x37   :  { %399 = vmatprep.subr.bf16.mxu0 %v531_v0  ;;  %403 = vmatprep.mubr.msk.bf16.mxu0 %vm532_vm0, %v531_v0  ;;  %v59_v3 = vld [vmem:[#allocation2] sm:$0xff]  ;;  %v60_v4 = vld [vmem:[#allocation2 + $0x8] sm:$0xff]  ;;  %vm78_vm1 = vcmask 261120   ;;  %v448_v6 = vld [vmem:[#allocation6] sm:$0xff]   ;;  %vm364_vm2 = vcmask 125952  }
  0x38   :  { %407 = vmatprep.subr.bf16.mxu1 %v531_v0  ;;  %411 = vmatprep.mubr.msk.bf16.mxu1 %vm532_vm0, %v531_v0  ;;  %v61_v5 = vpack.c.bf16 %v60_v4, %v59_v3  ;;  %v449_v7 = vld [vmem:[#allocation6 + $0x8] sm:$0xff]   ;;  %v450_v15 = vld [vmem:[#allocation4 + $0x10] sm:$0xff]   ;;  %v451_v16 = vld [vmem:[#allocation4 + $0x18] sm:$0xff]  }
  0x39   :  { %400 = vmatpush3.bf16.msra.mxu0 %v446_v1  ;;  %408 = vmatpush3.bf16.msra.mxu1 %v448_v6  ;;  %v452_v26 = vld [vmem:[#allocation6 + $0x10] sm:$0xff]   ;;  %v453_v27 = vld [vmem:[#allocation6 + $0x18] sm:$0xff]  }
  0x3a   :  { %401 = vmatprep.subr.bf16.mxu0 %v531_v0  ;;  %409 = vmatprep.subr.bf16.mxu1 %v531_v0  ;;  %v316_v45 = vld [vmem:[%s620_s3] sm:$0x3] }
  0x3d   :  { %402 = vmatpush3.bf16.msra.mxu0 %v447_v2  ;;  %410 = vmatpush3.bf16.msra.mxu1 %v449_v7 }
  0x3e   :  { %415 = vmatprep.subr.bf16.mxu0 %v531_v0  ;;  %423 = vmatprep.subr.bf16.mxu1 %v531_v0 }
  0x40   :  { %404 = vmatmul.mubr.msk.bf16.vlgmr.msra.gmra.mrb[0].mxu0 %vm78_vm1, %v61_v5 }
  0x41   :  { %419 = vmatprep.mubr.msk.bf16.mxu0 %vm532_vm0, %v531_v0  ;;  %416 = vmatpush3.bf16.msra.mxu0 %v450_v15 }
  0x42   :  { %417 = vmatprep.subr.bf16.mxu0 %v531_v0 }
  0x45   :  { %418 = vmatpush3.bf16.msra.mxu0 %v451_v16 }
  0x46   :  { %431 = vmatprep.subr.bf16.mxu0 %v531_v0 }
 0x113   :  { %v116_v8 = vpop.f32.mrb[0].mxu0 }
 0x114   :  { %v405_v9 = vpop.f32.mrb[1].mxu0  ;;  %v123_v11 = vmax.f32 %v116_v8, 0.0 }
 0x115   :  { %v119_v10 = vpop.f32.mrb[2].mxu0 }
 0x116   :  { %v124_v12 = vmax.f32 %v119_v10, 0.0  ;;  %v406_v13 = vpop.f32.mrb[3].mxu0 }
 0x118   :  { %v125_v14 = vpack.c.bf16 %v124_v12, %v123_v11 }
 0x11a   :  { %412 = vmatmul.mubr.msk.bf16.vlgmr.msra.gmra.mrb[0].mxu1 %vm78_vm1, %v125_v14 }
 0x11b   :  { %427 = vmatprep.mubr.msk.bf16.mxu1 %vm532_vm0, %v531_v0  ;;  %424 = vmatpush3.bf16.msra.mxu1 %v452_v26 }
 0x11c   :  { %425 = vmatprep.subr.bf16.mxu1 %v531_v0 }
 0x11f   :  { %426 = vmatpush3.bf16.msra.mxu1 %v453_v27 }
 0x1ed   :  { %v179_v17 = vpop.f32.mrb[0].mxu1 }
 0x1ee   :  { %v180_v18 = vadd.f32 %v179_v17, %v59_v3  ;;  %v413_v19 = vpop.f32.mrb[1].mxu1 }
 0x1ef   :  { %v182_v20 = vpop.f32.mrb[2].mxu1 }
 0x1f0   :  { %v183_v21 = vadd.f32 %v182_v20, %v60_v4  ;;  %v414_v22 = vpop.f32.mrb[3].mxu1  ;;  %v186_v23 = vmax.f32 %v180_v18, 0.0 }
 0x1f2   :  { %v187_v24 = vmax.f32 %v183_v21, 0.0 }
 0x1f4   :  { %v188_v25 = vpack.c.bf16 %v187_v24, %v186_v23 }
 0x1f6   :  { %420 = vmatmul.mubr.msk.bf16.vlgmr.msra.gmra.mrb[4].mxu0 %vm78_vm1, %v188_v25 }
 0x1f7   :  { %433 = vmatprep.mubr.msk.bf16.mxu0 %vm532_vm0, %v531_v0 }
 0x2c9   :  { %v243_v28 = vpop.f32.mrb[4].mxu0 }
 0x2ca   :  { %v421_v29 = vpop.f32.mrb[5].mxu0  ;;  %v250_v31 = vmax.f32 %v243_v28, 0.0 }
 0x2cb   :  { %v246_v30 = vpop.f32.mrb[6].mxu0 }
 0x2cc   :  { %v251_v32 = vmax.f32 %v246_v30, 0.0  ;;  %v422_v33 = vpop.f32.mrb[7].mxu0 }
 0x2ce   :  { %v252_v34 = vpack.c.bf16 %v251_v32, %v250_v31 }
 0x2d0   :  { %428 = vmatmul.mubr.msk.bf16.vlgmr.msra.gmra.mrb[4].mxu1 %vm78_vm1, %v252_v34 }
 0x3a3   :  { %v307_v35 = vpop.f32.mrb[4].mxu1 }
 0x3a4   :  { %v308_v36 = vadd.f32 %v307_v35, %v186_v23  ;;  %v429_v37 = vpop.f32.mrb[5].mxu1 }
 0x3a5   :  { %v310_v38 = vpop.f32.mrb[6].mxu1 }
 0x3a6   :  { %v311_v39 = vadd.f32 %v310_v38, %v187_v24  ;;  %v430_v40 = vpop.f32.mrb[7].mxu1  ;;  %v314_v41 = vmax.f32 %v308_v36, 0.0 }
 0x3a8   :  { %v315_v42 = vmax.f32 %v311_v39, 0.0 }
 0x3aa   :  { %v317_v43 = vpack.c.bf16 %v315_v42, %v314_v41 }
 0x3ac   :  { %v322_v44 = vsel %vm78_vm1, %v317_v43, 0 }
 0x3ad   :  { %432 = vmatpush3.bf16.xpose.msra.mxu0 %v322_v44 }
 0x3b4   :  { %434 = vmatmul.mubr.msk.bf16.vlgmr.msra.gmra.mrb[8].mxu0 %vm78_vm1, %v316_v45 }
 0x487   :  { %v358_v46 = vpop.f32.mrb[8].mxu0 }
 0x488   :  { %365 = vst.msk [vmem:[%s621_s4] sm:$0xf] %vm364_vm2, %v358_v46  ;;  %v435_v47 = vpop.f32.mrb[9].mxu0 }
 0x489   :  { %v361_v48 = vpop.f32.mrb[10].mxu0 }
 0x48a   :  { %v436_v49 = vpop.f32.mrb[11].mxu0 }
 0x48b   :  { %370 = vsyncpa [#allocation3], 1 }
 0x48c   :  { %371 = vsyncpa [#allocation5], 1 }

</bundles_post_ra>
